<compile_context>
chip_gen: v6e
topology: v6e:2x2x1
jax: 0.10.0
libtpu: 0.0.40
codegen_flags: <defaults>
</compile_context>

<pallas_src>
import functools

import jax
import jax.numpy as jnp
from jax.experimental import pallas as pl
from jax.experimental.pallas import tpu as pltpu


def _round_up(x, m):
    return ((x + m - 1) // m) * m


def _softplus(x):
    # Numerically stable softplus, matches torch.nn.Softplus (beta=1).
    return jnp.maximum(x, 0.0) + jnp.log1p(jnp.exp(-jnp.abs(x)))


def generator_kernel(
    noise_ref, cond_ref,
    w1n_ref, w1c_ref, b1_ref,
    w2_ref, b2_ref,
    w3_ref, b3_ref,
    o_ref,
):
    # Layer 1: split-weight matmul replaces cat([noise, cond]) @ W1.
    h1 = (
        jnp.dot(noise_ref[...], w1n_ref[...], preferred_element_type=jnp.float32)
        + jnp.dot(cond_ref[...], w1c_ref[...], preferred_element_type=jnp.float32)
        + b1_ref[...]
    )
    h1 = _softplus(h1)

    # Layer 2.
    h2 = jnp.dot(h1, w2_ref[...], preferred_element_type=jnp.float32) + b2_ref[...]
    h2 = _softplus(h2)

    # Layer 3 (no activation, matching forward()). Output is unpadded: the lane
    # dim equals the full array dim, so no 8x padded HBM writeback.
    o_ref[...] = (
        jnp.dot(h2, w3_ref[...], preferred_element_type=jnp.float32) + b3_ref[...]
    ).astype(o_ref.dtype)


# Per-tile VMEM at block_b=4096, dims (16,16,32,64,16):
#   inputs ~0.5 MB, output ~0.25 MB (double-buffered ~1.5 MB) + h1/h2 ~1.5 MB
# -> comfortably inside the 32 MiB scoped limit on every generation incl. v7x.
_BLOCK_B_CAP = 4096


def _choose_block_b(batch, cap=_BLOCK_B_CAP):
    """Largest batch tile (multiple of 8) up to `cap`.  No forced split for
    small batches (grid=1 is optimal on single-TC v5e/v6e); when more than one
    tile is needed, even out the tile count so both v7x TensorCores get equal
    work."""
    b_pad = _round_up(max(batch, 1), 8)
    block = min(cap, b_pad)
    n_tiles = -(-b_pad // block)
    if n_tiles > 1 and n_tiles % 2 == 1:
        n_tiles += 1
        block = _round_up(-(-b_pad // n_tiles), 8)
    return block


@functools.partial(jax.jit, static_argnames=("block_b",))
def generator_forward(noise, condition, params, block_b=None):
    """Pallas implementation of Generator.forward.

    noise:     [B, noise_dim]
    condition: [B, cond_dim]
    params:    (w1, b1, w2, b2, w3, b3) with weights stored transposed vs.
               PyTorch, i.e. w1: [noise_dim+cond_dim, hidden],
               w2: [hidden, 2*hidden], w3: [2*hidden, output_dim];
               biases shaped [1, dim].
    returns:   [B, output_dim] float32
    """
    w1, b1, w2, b2, w3, b3 = params

    noise = noise.astype(jnp.float32)
    condition = condition.astype(jnp.float32)

    B, noise_dim = noise.shape
    cond_dim = condition.shape[1]
    hidden_dim = w1.shape[1]
    hidden2 = w2.shape[1]
    output_dim = w3.shape[1]

    # Split W1 so the kernel never needs the concatenated input.
    w1n = w1[:noise_dim, :]
    w1c = w1[noise_dim:, :]

    # Batch tiling: biggest tile that fits, multiple of 8, no forced grid split.
    if block_b is None:
        block_b = _choose_block_b(B)
    block_b = int(block_b)
    if block_b <= 0 or block_b % 8 != 0:
        raise ValueError(f"block_b must be a positive multiple of 8, got {block_b}")

    B_pad = _round_up(max(B, block_b), block_b)
    padded = B_pad != B
    if padded:
        noise = jnp.pad(noise, ((0, B_pad - B), (0, 0)))
        condition = jnp.pad(condition, ((0, B_pad - B), (0, 0)))

    grid = (B_pad // block_b,)

    out = pl.pallas_call(
        generator_kernel,
        out_shape=jax.ShapeDtypeStruct((B_pad, output_dim), jnp.float32),
        grid_spec=pltpu.PrefetchScalarGridSpec(
            num_scalar_prefetch=0,
            grid=grid,
            in_specs=[
                pl.BlockSpec((block_b, noise_dim), lambda i: (i, 0)),     # noise tile
                pl.BlockSpec((block_b, cond_dim), lambda i: (i, 0)),      # condition tile
                pl.BlockSpec((noise_dim, hidden_dim), lambda i: (0, 0)),  # W1_noise
                pl.BlockSpec((cond_dim, hidden_dim), lambda i: (0, 0)),   # W1_cond
                pl.BlockSpec((1, hidden_dim), lambda i: (0, 0)),          # b1
                pl.BlockSpec((hidden_dim, hidden2), lambda i: (0, 0)),    # W2
                pl.BlockSpec((1, hidden2), lambda i: (0, 0)),             # b2
                pl.BlockSpec((hidden2, output_dim), lambda i: (0, 0)),    # W3
                pl.BlockSpec((1, output_dim), lambda i: (0, 0)),          # b3
            ],
            out_specs=pl.BlockSpec((block_b, output_dim), lambda i: (i, 0)),
        ),
        compiler_params=pltpu.CompilerParams(
            dimension_semantics=("parallel",),
            vmem_limit_bytes=32 << 20,
        ),
    )(noise, condition, w1n, w1c, b1, w2, b2, w3, b3)

    if padded:
        out = out[:B, :]
    return out


def init_generator_params(key, noise_dim, cond_dim, hidden_dim, output_dim):
    """Deterministic init mimicking nn.Linear's uniform(-1/sqrt(fan_in), 1/sqrt(fan_in))."""
    input_dim = noise_dim + cond_dim

    def linear(key, fan_in, fan_out):
        kw, kb = jax.random.split(key)
        bound = 1.0 / jnp.sqrt(fan_in)
        w = jax.random.uniform(kw, (fan_in, fan_out), jnp.float32, -bound, bound)
        b = jax.random.uniform(kb, (1, fan_out), jnp.float32, -bound, bound)
        return w, b

    k1, k2, k3 = jax.random.split(key, 3)
    w1, b1 = linear(k1, input_dim, hidden_dim)
    w2, b2 = linear(k2, hidden_dim, hidden_dim * 2)
    w3, b3 = linear(k3, hidden_dim * 2, output_dim)
    return (w1, b1, w2, b2, w3, b3)


def generator_reference(noise, condition, params):
    """Pure-JAX reference for correctness check."""
    w1, b1, w2, b2, w3, b3 = params
    x = jnp.concatenate([noise, condition], axis=-1).astype(jnp.float32)
    h1 = jax.nn.softplus(x @ w1 + b1)
    h2 = jax.nn.softplus(h1 @ w2 + b2)
    return h2 @ w3 + b3


if __name__ == "__main__":
    noise_dim = 16
    cond_dim = 16
    hidden_dim = 32
    output_dim = 16

    key = jax.random.PRNGKey(0)
    k_params, k_noise, k_cond = jax.random.split(key, 3)
    params = init_generator_params(k_params, noise_dim, cond_dim, hidden_dim, output_dim)

    # Case 1: aligned batch -> single tile, no wrapper pad/slice.
    batch = 16
    noise = jax.random.normal(k_noise, (batch, noise_dim), jnp.float32)
    condition = jax.random.normal(k_cond, (batch, cond_dim), jnp.float32)
    out = jax.block_until_ready(generator_forward(noise, condition, params))
    ref = generator_reference(noise, condition, params)
    assert out.shape == (batch, output_dim)
    assert jnp.allclose(out, ref, atol=1e-5, rtol=1e-5), "mismatch vs reference (aligned)"

    # Case 2: ragged batch -> exercises the padded-batch path.
    batch2 = 20
    noise2 = jax.random.normal(jax.random.PRNGKey(1), (batch2, noise_dim), jnp.float32)
    cond2 = jax.random.normal(jax.random.PRNGKey(2), (batch2, cond_dim), jnp.float32)
    out2 = jax.block_until_ready(generator_forward(noise2, cond2, params))
    ref2 = generator_reference(noise2, cond2, params)
    assert out2.shape == (batch2, output_dim)
    assert jnp.allclose(out2, ref2, atol=1e-5, rtol=1e-5), "mismatch vs reference (ragged)"

    print("KERNEL_OK")
</pallas_src>

<mosaic_0001>
module attributes {stable_mosaic.version = 11 : i64} {
  func.func @generator_kernel(%arg0: i32, %arg1: memref<16x16xf32, #tpu.memory_space<vmem>>, %arg2: memref<16x16xf32, #tpu.memory_space<vmem>>, %arg3: memref<16x32xf32, #tpu.memory_space<vmem>>, %arg4: memref<16x32xf32, #tpu.memory_space<vmem>>, %arg5: memref<1x32xf32, #tpu.memory_space<vmem>>, %arg6: memref<32x64xf32, #tpu.memory_space<vmem>>, %arg7: memref<1x64xf32, #tpu.memory_space<vmem>>, %arg8: memref<64x16xf32, #tpu.memory_space<vmem>>, %arg9: memref<1x16xf32, #tpu.memory_space<vmem>>, %arg10: memref<16x16xf32, #tpu.memory_space<vmem>>) attributes {dimension_semantics = [#tpu.dimension_semantics<parallel>], iteration_bounds = array<i64: 1>, scalar_prefetch = 0 : i64, scratch_operands = 0 : i64, tpu.core_type = #tpu.core_type<tc>, window_params = [{transform_indices = @transform_0, window_bounds = array<i64: 16, 16>}, {transform_indices = @transform_1, window_bounds = array<i64: 16, 16>}, {pipeline_mode = #tpu.pipeline_mode<synchronous>, transform_indices = @transform_2, window_bounds = array<i64: 16, 32>}, {pipeline_mode = #tpu.pipeline_mode<synchronous>, transform_indices = @transform_3, window_bounds = array<i64: 16, 32>}, {pipeline_mode = #tpu.pipeline_mode<synchronous>, transform_indices = @transform_4, window_bounds = array<i64: 1, 32>}, {pipeline_mode = #tpu.pipeline_mode<synchronous>, transform_indices = @transform_5, window_bounds = array<i64: 32, 64>}, {pipeline_mode = #tpu.pipeline_mode<synchronous>, transform_indices = @transform_6, window_bounds = array<i64: 1, 64>}, {pipeline_mode = #tpu.pipeline_mode<synchronous>, transform_indices = @transform_7, window_bounds = array<i64: 64, 16>}, {pipeline_mode = #tpu.pipeline_mode<synchronous>, transform_indices = @transform_8, window_bounds = array<i64: 1, 16>}, {transform_indices = @transform_9, window_bounds = array<i64: 16, 16>}]} {
    %c0 = arith.constant 0 : index
    %c0_0 = arith.constant 0 : index
    %0 = vector.load %arg1[%c0, %c0_0] : memref<16x16xf32, #tpu.memory_space<vmem>>, vector<16x16xf32>
    %c0_1 = arith.constant 0 : index
    %c0_2 = arith.constant 0 : index
    %1 = vector.load %arg3[%c0_1, %c0_2] : memref<16x32xf32, #tpu.memory_space<vmem>>, vector<16x32xf32>
    %cst = arith.constant dense<0.000000e+00> : vector<16x32xf32>
    %2 = tpu.matmul %0, %1, %cst {dimension_numbers = #tpu.dot_dimension_numbers<[1], [0], [0], [1], [0, 0, 1, 1], [], []>} : vector<16x16xf32>, vector<16x32xf32>, vector<16x32xf32> -> vector<16x32xf32>
    %c0_3 = arith.constant 0 : index
    %c0_4 = arith.constant 0 : index
    %3 = vector.load %arg2[%c0_3, %c0_4] : memref<16x16xf32, #tpu.memory_space<vmem>>, vector<16x16xf32>
    %c0_5 = arith.constant 0 : index
    %c0_6 = arith.constant 0 : index
    %4 = vector.load %arg4[%c0_5, %c0_6] : memref<16x32xf32, #tpu.memory_space<vmem>>, vector<16x32xf32>
    %cst_7 = arith.constant dense<0.000000e+00> : vector<16x32xf32>
    %5 = tpu.matmul %3, %4, %cst_7 {dimension_numbers = #tpu.dot_dimension_numbers<[1], [0], [0], [1], [0, 0, 1, 1], [], []>} : vector<16x16xf32>, vector<16x32xf32>, vector<16x32xf32> -> vector<16x32xf32>
    %6 = arith.addf %2, %5 : vector<16x32xf32>
    %c0_8 = arith.constant 0 : index
    %c0_9 = arith.constant 0 : index
    %7 = vector.load %arg5[%c0_8, %c0_9] : memref<1x32xf32, #tpu.memory_space<vmem>>, vector<1x32xf32>
    %8 = vector.broadcast %7 : vector<1x32xf32> to vector<16x32xf32>
    %9 = arith.addf %6, %8 : vector<16x32xf32>
    %cst_10 = arith.constant 0.000000e+00 : f32
    %10 = vector.broadcast %cst_10 : f32 to vector<16x32xf32>
    %11 = arith.maximumf %9, %10 : vector<16x32xf32>
    %12 = math.absf %9 : vector<16x32xf32>
    %cst_11 = arith.constant 0.000000e+00 : f32
    %13 = vector.broadcast %cst_11 : f32 to vector<16x32xf32>
    %14 = arith.subf %13, %12 : vector<16x32xf32>
    %15 = math.exp %14 : vector<16x32xf32>
    %16 = math.log1p %15 : vector<16x32xf32>
    %17 = arith.addf %11, %16 : vector<16x32xf32>
    %c0_12 = arith.constant 0 : index
    %c0_13 = arith.constant 0 : index
    %18 = vector.load %arg6[%c0_12, %c0_13] : memref<32x64xf32, #tpu.memory_space<vmem>>, vector<32x64xf32>
    %cst_14 = arith.constant dense<0.000000e+00> : vector<16x64xf32>
    %19 = tpu.matmul %17, %18, %cst_14 {dimension_numbers = #tpu.dot_dimension_numbers<[1], [0], [0], [1], [0, 0, 1, 1], [], []>} : vector<16x32xf32>, vector<32x64xf32>, vector<16x64xf32> -> vector<16x64xf32>
    %c0_15 = arith.constant 0 : index
    %c0_16 = arith.constant 0 : index
    %20 = vector.load %arg7[%c0_15, %c0_16] : memref<1x64xf32, #tpu.memory_space<vmem>>, vector<1x64xf32>
    %21 = vector.broadcast %20 : vector<1x64xf32> to vector<16x64xf32>
    %22 = arith.addf %19, %21 : vector<16x64xf32>
    %cst_17 = arith.constant 0.000000e+00 : f32
    %23 = vector.broadcast %cst_17 : f32 to vector<16x64xf32>
    %24 = arith.maximumf %22, %23 : vector<16x64xf32>
    %25 = math.absf %22 : vector<16x64xf32>
    %cst_18 = arith.constant 0.000000e+00 : f32
    %26 = vector.broadcast %cst_18 : f32 to vector<16x64xf32>
    %27 = arith.subf %26, %25 : vector<16x64xf32>
    %28 = math.exp %27 : vector<16x64xf32>
    %29 = math.log1p %28 : vector<16x64xf32>
    %30 = arith.addf %24, %29 : vector<16x64xf32>
    %c0_19 = arith.constant 0 : index
    %c0_20 = arith.constant 0 : index
    %31 = vector.load %arg8[%c0_19, %c0_20] : memref<64x16xf32, #tpu.memory_space<vmem>>, vector<64x16xf32>
    %cst_21 = arith.constant dense<0.000000e+00> : vector<16x16xf32>
    %32 = tpu.matmul %30, %31, %cst_21 {dimension_numbers = #tpu.dot_dimension_numbers<[1], [0], [0], [1], [0, 0, 1, 1], [], []>} : vector<16x64xf32>, vector<64x16xf32>, vector<16x16xf32> -> vector<16x16xf32>
    %c0_22 = arith.constant 0 : index
    %c0_23 = arith.constant 0 : index
    %33 = vector.load %arg9[%c0_22, %c0_23] : memref<1x16xf32, #tpu.memory_space<vmem>>, vector<1x16xf32>
    %34 = vector.broadcast %33 : vector<1x16xf32> to vector<16x16xf32>
    %35 = arith.addf %32, %34 : vector<16x16xf32>
    %c0_24 = arith.constant 0 : index
    %c0_25 = arith.constant 0 : index
    %36 = vector.load %arg10[%c0_24, %c0_25] : memref<16x16xf32, #tpu.memory_space<vmem>>, vector<16x16xf32>
    tpu.vector_store %arg10[%c0_24, %c0_25], %35 {strides = array<i32>} : memref<16x16xf32, #tpu.memory_space<vmem>>, vector<16x16xf32>,
    return
  }
  func.func @transform_0(%arg0: i32) -> (i32, i32) {
    %c0_i32 = arith.constant 0 : i32
    %c0_i32_0 = arith.constant 0 : i32
    return %arg0, %c0_i32 : i32, i32
  }
  func.func @transform_1(%arg0: i32) -> (i32, i32) {
    %c0_i32 = arith.constant 0 : i32
    %c0_i32_0 = arith.constant 0 : i32
    return %arg0, %c0_i32 : i32, i32
  }
  func.func @transform_2(%arg0: i32) -> (i32, i32) {
    %c0_i32 = arith.constant 0 : i32
    %c0_i32_0 = arith.constant 0 : i32
    %c0_i32_1 = arith.constant 0 : i32
    return %c0_i32, %c0_i32_0 : i32, i32
  }
  func.func @transform_3(%arg0: i32) -> (i32, i32) {
    %c0_i32 = arith.constant 0 : i32
    %c0_i32_0 = arith.constant 0 : i32
    %c0_i32_1 = arith.constant 0 : i32
    return %c0_i32, %c0_i32_0 : i32, i32
  }
  func.func @transform_4(%arg0: i32) -> (i32, i32) {
    %c0_i32 = arith.constant 0 : i32
    %c0_i32_0 = arith.constant 0 : i32
    %c0_i32_1 = arith.constant 0 : i32
    return %c0_i32, %c0_i32_0 : i32, i32
  }
  func.func @transform_5(%arg0: i32) -> (i32, i32) {
    %c0_i32 = arith.constant 0 : i32
    %c0_i32_0 = arith.constant 0 : i32
    %c0_i32_1 = arith.constant 0 : i32
    return %c0_i32, %c0_i32_0 : i32, i32
  }
  func.func @transform_6(%arg0: i32) -> (i32, i32) {
    %c0_i32 = arith.constant 0 : i32
    %c0_i32_0 = arith.constant 0 : i32
    %c0_i32_1 = arith.constant 0 : i32
    return %c0_i32, %c0_i32_0 : i32, i32
  }
  func.func @transform_7(%arg0: i32) -> (i32, i32) {
    %c0_i32 = arith.constant 0 : i32
    %c0_i32_0 = arith.constant 0 : i32
    %c0_i32_1 = arith.constant 0 : i32
    return %c0_i32, %c0_i32_0 : i32, i32
  }
  func.func @transform_8(%arg0: i32) -> (i32, i32) {
    %c0_i32 = arith.constant 0 : i32
    %c0_i32_0 = arith.constant 0 : i32
    %c0_i32_1 = arith.constant 0 : i32
    return %c0_i32, %c0_i32_0 : i32, i32
  }
  func.func @transform_9(%arg0: i32) -> (i32, i32) {
    %c0_i32 = arith.constant 0 : i32
    %c0_i32_0 = arith.constant 0 : i32
    return %arg0, %c0_i32 : i32, i32
  }
}

</mosaic_0001>

<bundles_post_ra>
// kernel: generator_forward.1
= control target key start
LH: loop header
LB: loop body
LE: loop exit
PB: predicated region body
PF: predicated region fallthrough
CT: control target
= control target key end

     0   :  { %vm41_vm0 = vcmask 130048   ;;  %s732_s0 = inlined_call_operand.vmem [shape: f32[16,16], index: 0, kind: input, shape index: {}]   ;;  %s733_s1 = inlined_call_operand.vmem [shape: f32[16,16], index: 1, kind: input, shape index: {}]   ;;  %s734_s2 = inlined_call_operand.vmem [shape: f32[16,32], index: 2, kind: input, shape index: {}]   ;;  %s735_s3 = inlined_call_operand.vmem [shape: f32[16,32], index: 3, kind: input, shape index: {}]   ;;  %s736_s4 = inlined_call_operand.vmem [shape: f32[1,32], index: 4, kind: input, shape index: {}]   ;;  %s737_s5 = inlined_call_operand.vmem [shape: f32[32,64], index: 5, kind: input, shape index: {}]   ;;  %s738_s6 = inlined_call_operand.vmem [shape: f32[1,64], index: 6, kind: input, shape index: {}]   ;;  %s739_s7 = inlined_call_operand.vmem [shape: f32[64,16], index: 7, kind: input, shape index: {}]   ;;  %s740_s8 = inlined_call_operand.vmem [shape: f32[1,16], index: 8, kind: input, shape index: {}]   ;;  %s741_s9 = inlined_call_operand.hbm [shape: f32[16,16], index: 9, kind: output, shape index: {}]  }
   0x1   :  { %v40_v0 = vld [vmem:[%s735_s3 + $0x8] sm:$0xff]  ;;  %v39_v1 = vld [vmem:[%s735_s3] sm:$0xff] }
   0x2   :  { %v37_v2 = vld [vmem:[%s733_s1] sm:$0xff]  ;;  %516 = vmatprep.subr.mxu0 %v40_v0  ;;  %v38_v3 = vld [vmem:[%s733_s1 + $0x8] sm:$0xff] }
   0x3   :  { %520 = vmatprep.mubr.msk.f32.mxu0 %vm41_vm0, %v37_v2  ;;  %517 = vmatpush3.msra.mxu0 %v40_v0  ;;  %v36_v4 = vld [vmem:[%s734_s2 + $0x8] sm:$0xff] }
   0x4   :  { %14 = vsyncpa [#allocation3], 0  ;;  %518 = vmatprep.subr.mxu0 %v39_v1  ;;  %v33_v5 = vld [vmem:[%s732_s0] sm:$0xff]  ;;  %v34_v7 = vld [vmem:[%s732_s0 + $0x8] sm:$0xff]  ;;  %vm254_vm3 = vcmask 261120   ;;  %vm381_vm6 = vcmask 523264  }
   0x5   :  { %519 = vmatpush3.msra.mxu0 %v39_v1  ;;  %v35_v6 = vld [vmem:[%s734_s2] sm:$0xff]  ;;  %v246_v8 = vld [vmem:[%s737_s5 + $0x18] sm:$0xff]  ;;  %v245_v9 = vld [vmem:[%s737_s5 + $0x10] sm:$0xff]  ;;  %s601_s24 = smov [#allocation2]  }
   0x6   :  { %521 = vmatmul.mubr.msk.f32.vlgmr.msra.gmra.mxu0 %vm41_vm0, %v38_v3  ;;  %523 = vmatprep.subr.mxu0 %v36_v4  ;;  %v244_v10 = vld [vmem:[%s737_s5 + $0x8] sm:$0xff]  ;;  %v243_v11 = vld [vmem:[%s737_s5] sm:$0xff]  ;;  %v373_v49 = vld [vmem:[%s739_s7 + $0x38] sm:$0xff]  ;;  %s470_s2 = sshll.u32 %s601_s24, 4  ;;  %s471_s2 = int_to_ptr.vmem [resolvable:$true] %s470_s2 }
   0x7   :  { %524 = vmatpush3.msra.mxu0 %v36_v4  ;;  %527 = vmatprep.mubr.msk.f32.mxu0 %vm41_vm0, %v33_v5  ;;  %v485_v15 = vld [vmem:[%s736_s4] ss:$0 sm:$0xff]  ;;  %v372_v50 = vld [vmem:[%s739_s7 + $0x30] sm:$0xff]  ;;  %v371_v51 = vld [vmem:[%s739_s7 + $0x28] sm:$0xff]  ;;  %s579_s25 = scalar_lea.vmem %s471_s2, 256  ;;  %p584_p1 = scmp.lt.s32.totalorder %s471_s2, %s471_s2 }
   0x8   :  { %525 = vmatprep.subr.mxu0 %v35_v6  ;;  %541 = vmatprep.subr.mxu1 %v373_v49  ;;  %v370_v52 = vld [vmem:[%s739_s7 + $0x20] sm:$0xff]  ;;  %v369_v53 = vld [vmem:[%s739_s7 + $0x18] sm:$0xff]  ;;  %v368_v54 = vld [vmem:[%s739_s7 + $0x10] sm:$0xff]  ;;  %p580_p0 = scmp.ne.s32.totalorder %s471_s2, %s579_s25  ;;  %p585_p2 = scmp.lt.s32.totalorder %s579_s25, %s579_s25 }
   0x9   :  { %526 = vmatpush3.msra.mxu0 %v35_v6  ;;  %542 = vmatpush3.msra.mxu1 %v373_v49  ;;  %v367_v55 = vld [vmem:[%s739_s7 + $0x8] sm:$0xff]  ;;  %v366_v56 = vld [vmem:[%s739_s7] sm:$0xff] }
   0xa   :  { %528 = vmatmul.mubr.msk.f32.vlgmr.msra.gmra.mxu0 %vm41_vm0, %v34_v7  ;;  %530 = vmatprep.subr.mxu0 %v246_v8  ;;  %v486_v57 = vld [vmem:[%s738_s6] ss:$0 sm:$0xff]  ;;  %p586_p3 = por %p585_p2, %p584_p1 }
   0xb   :  { %531 = vmatpush3.msra.mxu0 %v246_v8  ;;  %543 = vmatprep.subr.mxu1 %v372_v50 }
   0xc   :  { %532 = vmatprep.subr.mxu0 %v245_v9  ;;  %544 = vmatpush3.msra.mxu1 %v372_v50  ;;  %p587_p4 = pnand %p586_p3, %p580_p0 }
   0xd   :  { %533 = vmatpush3.msra.mxu0 %v245_v9  ;;  %545 = vmatprep.subr.mxu1 %v371_v51 }
   0xe   :  { %534 = vmatprep.subr.mxu0 %v244_v10  ;;  %546 = vmatpush3.msra.mxu1 %v371_v51 }
   0xf   :  { %535 = vmatpush3.msra.mxu0 %v244_v10  ;;  %547 = vmatprep.subr.mxu1 %v370_v52 }
  0x10   :  { %536 = vmatprep.subr.mxu0 %v243_v11  ;;  %548 = vmatpush3.msra.mxu1 %v370_v52 }
  0x11   :  { %537 = vmatpush3.msra.mxu0 %v243_v11  ;;  %549 = vmatprep.subr.mxu1 %v369_v53 }
  0x12   :  { %550 = vmatpush3.msra.mxu1 %v369_v53 }
  0x13   :  { %551 = vmatprep.subr.mxu1 %v368_v54 }
  0x14   :  { %552 = vmatpush3.msra.mxu1 %v368_v54 }
  0x15   :  { %553 = vmatprep.subr.mxu1 %v367_v55 }
  0x16   :  { %554 = vmatpush3.msra.mxu1 %v367_v55 }
  0x17   :  { %555 = vmatprep.subr.mxu1 %v366_v56 }
  0x18   :  { %556 = vmatpush3.msra.mxu1 %v366_v56 }
  0xc6   :  { %v522_v12 = vpop.f32.mrf.mxu0 }
  0xc8   :  { %v114_v13 = vpop.f32.mrf.mxu0 }
  0xca   :  { %v529_v14 = vpop.f32.mrf.mxu0 }
  0xcb   :  { %v201_v16 = vadd.f32 %v529_v14, %v522_v12 }
  0xcc   :  { %v195_v17 = vpop.f32.mrf.mxu0 }
  0xcd   :  { %v212_v18 = vadd.f32 %v485_v15, %v201_v16  ;;  %v196_v19 = vadd.f32 %v195_v17, %v114_v13 }
  0xcf   :  { %v216_v20 = vand.u32 2147483647, %v212_v18  ;;  %v211_v21 = vadd.f32 %v485_v15, %v196_v19  ;;  %v214_v45 = vmax.f32 %v212_v18, 0.0 }
  0xd1   :  { %v218_v22 = vsub.f32 0.0, %v216_v20  ;;  %v215_v23 = vand.u32 2147483647, %v211_v21  ;;  %v213_v44 = vmax.f32 %v211_v21, 0.0 }
  0xd3   :  { %v221_v24 = vmul.f32 1.442695, %v218_v22  ;;  %v217_v25 = vsub.f32 0.0, %v215_v23 }
  0xd5   :  { %563 = vpow2.f32 %v221_v24  ;;  %v219_v26 = vmul.f32 1.442695, %v217_v25 }
  0xd7   :  { %565 = vpow2.f32 %v219_v26  ;;  %v489_v26 = vld [vmem:[%s740_s8] ss:$0 sm:$0xff] }
  0xe2   :  { %v564_v27 = vpop.eup %563 }
  0xe3   :  { %v232_v28 = vadd.f32 1.0, %v564_v27  ;;  %v235_v31 = vmul.f32 -0.5, %v564_v27  ;;  %v238_v34 = vand.u32 2147483647, %v564_v27 }
  0xe4   :  { %v566_v29 = vpop.eup %565 }
  0xe5   :  { %567 = vlog2.f32 %v232_v28  ;;  %v223_v30 = vadd.f32 1.0, %v566_v29  ;;  %v226_v32 = vmul.f32 -0.5, %v566_v29  ;;  %v236_v33 = vadd.f32 1.0, %v235_v31 }
  0xe6   :  { %v229_v37 = vand.u32 2147483647, %v566_v29  ;;  %vm239_vm1 = vcmp.lt.f32.partialorder %v238_v34, 0.0004427343 }
  0xe7   :  { %569 = vlog2.f32 %v223_v30  ;;  %v227_v35 = vadd.f32 1.0, %v226_v32  ;;  %v237_v40 = vmul.f32 %v564_v27, %v236_v33 }
  0xe8   :  { %vm230_vm2 = vcmp.lt.f32.partialorder %v229_v37, 0.0004427343 }
  0xe9   :  { %v228_v42 = vmul.f32 %v566_v29, %v227_v35 }
  0xf2   :  { %v568_v36 = vpop.eup %567 }
  0xf3   :  { %v234_v38 = vmul.f32 0.6931472, %v568_v36 }
  0xf4   :  { %v570_v39 = vpop.eup %569 }
  0xf5   :  { %v225_v41 = vmul.f32 0.6931472, %v570_v39  ;;  %v240_v43 = vsel %vm239_vm1, %v237_v40, %v234_v38 }
  0xf6   :  { %v242_v48 = vadd.f32 %v240_v43, %v214_v45 }
  0xf7   :  { %v231_v46 = vsel %vm230_vm2, %v228_v42, %v225_v41 }
  0xf8   :  { %v241_v47 = vadd.f32 %v231_v46, %v213_v44 }
  0xfa   :  { %538 = vmatprep.mubr.msk.f32.mxu0 %vm254_vm3, %v241_v47 }
  0xfb   :  { %539 = vmatmul.mubr.msk.f32.vlgmr.msra.gmra.mxu0 %vm254_vm3, %v242_v48 }
 0x1bb   :  { %v540_v58 = vpop.f32.mrf.mxu0 }
 0x1bc   :  { %v333_v59 = vadd.f32 %v540_v58, %v486_v57 }
 0x1bd   :  { %v327_v60 = vpop.f32.mrf.mxu0 }
 0x1be   :  { %v339_v61 = vand.u32 2147483647, %v333_v59  ;;  %v328_v62 = vadd.f32 %v486_v57, %v327_v60  ;;  %v337_v22 = vmax.f32 %v333_v59, 0.0 }
 0x1c0   :  { %v341_v63 = vsub.f32 0.0, %v339_v61  ;;  %v338_v0 = vand.u32 2147483647, %v328_v62  ;;  %v336_v21 = vmax.f32 %v328_v62, 0.0 }
 0x1c2   :  { %v344_v1 = vmul.f32 1.442695, %v341_v63  ;;  %v340_v2 = vsub.f32 0.0, %v338_v0 }
 0x1c4   :  { %571 = vpow2.f32 %v344_v1  ;;  %v342_v3 = vmul.f32 1.442695, %v340_v2 }
 0x1c6   :  { %573 = vpow2.f32 %v342_v3 }
 0x1d1   :  { %v572_v4 = vpop.eup %571 }
 0x1d2   :  { %v355_v5 = vadd.f32 1.0, %v572_v4  ;;  %v358_v8 = vmul.f32 -0.5, %v572_v4  ;;  %v361_v11 = vand.u32 2147483647, %v572_v4 }
 0x1d3   :  { %v574_v6 = vpop.eup %573 }
 0x1d4   :  { %575 = vlog2.f32 %v355_v5  ;;  %v346_v7 = vadd.f32 1.0, %v574_v6  ;;  %v349_v9 = vmul.f32 -0.5, %v574_v6  ;;  %v359_v10 = vadd.f32 1.0, %v358_v8 }
 0x1d5   :  { %v352_v14 = vand.u32 2147483647, %v574_v6  ;;  %vm362_vm4 = vcmp.lt.f32.partialorder %v361_v11, 0.0004427343 }
 0x1d6   :  { %577 = vlog2.f32 %v346_v7  ;;  %v350_v12 = vadd.f32 1.0, %v349_v9  ;;  %v360_v17 = vmul.f32 %v572_v4, %v359_v10 }
 0x1d7   :  { %vm353_vm5 = vcmp.lt.f32.partialorder %v352_v14, 0.0004427343 }
 0x1d8   :  { %v351_v19 = vmul.f32 %v574_v6, %v350_v12 }
 0x1e1   :  { %v576_v13 = vpop.eup %575 }
 0x1e2   :  { %v357_v15 = vmul.f32 0.6931472, %v576_v13 }
 0x1e3   :  { %v578_v16 = vpop.eup %577 }
 0x1e4   :  { %v348_v18 = vmul.f32 0.6931472, %v578_v16  ;;  %v363_v20 = vsel %vm362_vm4, %v360_v17, %v357_v15 }
 0x1e5   :  { %v365_v25 = vadd.f32 %v363_v20, %v337_v22 }
 0x1e6   :  { %v354_v23 = vsel %vm353_vm5, %v351_v19, %v348_v18 }
 0x1e7   :  { %v364_v24 = vadd.f32 %v354_v23, %v336_v21 }
 0x1e9   :  { %557 = vmatprep.mubr.msk.f32.mxu1 %vm381_vm6, %v364_v24 }
 0x1ea   :  { %558 = vmatmul.mubr.msk.f32.vlgmr.msra.gmra.mxu1 %vm381_vm6, %v365_v25 }
 0x2aa   :  { %v559_v27 = vpop.f32.mrf.mxu1 }
 0x2ab   :  { %v460_v28 = vadd.f32 %v559_v27, %v489_v26 }
 0x2ac   :  { %v454_v29 = vpop.f32.mrf.mxu1 }
 0x2ad   :  { %464 = vst.msk [vmem:[#allocation2 + $0x8] sm:$0xff] %vm41_vm0, %v460_v28  ;;  %v455_v30 = vadd.f32 %v489_v26, %v454_v29 }
 0x2af   :  { %463 = vst.msk [vmem:[#allocation2] sm:$0xff] %vm41_vm0, %v455_v30 }
 0x2b0   :  { %590 = shalt.err (!%p587_p4)
}
 0x2b1   :  { %s602_s26 = smov 128   ;;  %s603_s8 = smov 8  }
 0x2b2   :  { %476 = dma.vmem_to_hbm [thread:$0]  %s471_s2, 256, %s741_s9, [#allocation3], %s602_s26, %s602_s26, %s603_s8  }
 0x2b3   :  { %599 = dma.done.wait [#allocation3], 256  }
 0x2b4   :  { %600 = vsyncadd [#allocation3], 4294967040 }
 0x2b5   :  { %480 = vsyncpa [#allocation3], 1 }

</bundles_post_ra>
